<compile_context>
chip_gen: v7x
topology: tpu7x:2x2x1
jax: 0.10.0
libtpu: 0.0.40
codegen_flags: <defaults>
</compile_context>

<pallas_src>
import jax
import jax.numpy as jnp
from jax.experimental import pallas as pl
from jax.experimental.pallas import tpu as pltpu


def _linear_kernel(xt_ref, wt_ref, b_ref, ot_ref):
    """One batch tile of y_t = W @ x_t + b, computed on the VPU only.

    xt_ref: (F, tile_n)  VMEM  feature-major x tile (batch rows on lanes)
    wt_ref: (F, O)       VMEM  transposed weight (resident, tiny)
    b_ref : (O,)         SMEM  bias scalars
    ot_ref: (O, tile_n)  VMEM  lane-dense output tile
    """
    xt = xt_ref[...].astype(jnp.float32)            # dense vregs: F sublanes x tile_n lanes
    n_out = ot_ref.shape[0]                         # static (default 1)
    for o in range(n_out):
        w_col = wt_ref[:, o:o + 1].astype(jnp.float32)      # (F, 1) -> lane broadcast
        # VPU multiply + sublane reduce over F; result is naturally lane-dense.
        row = jnp.sum(xt * w_col, axis=0, keepdims=True)    # (1, tile_n)
        ot_ref[o:o + 1, :] = (row + b_ref[o]).astype(ot_ref.dtype)


def _choose_tile_n(n):
    """Pick a lane-aligned batch tile (multiple of 128) near the roofline knee."""
    # Prefer >=2 grid steps so DMA/compute overlap and v7x megacore sharding kick in.
    for cand in (8192, 4096, 2048, 1024, 512, 256, 128):
        if n % cand == 0 and n // cand >= 2:
            return cand
    if n % 128 == 0:
        return n            # small lane-aligned batch: single full block
    if n <= 1024:
        return n            # tiny ragged batch: one full-array block (always legal)
    return 2048             # large ragged batch: pad up to 2048-row tiles


def wtp_regression_forward(x, weight, bias, *, tile_n=None):
    """y = x @ weight.T + bias   (PyTorch nn.Linear forward).

    x:      (N, F) float32
    weight: (O, F) float32  (PyTorch layout)
    bias:   (O,)   float32
    returns (N, O) float32
    """
    n, f = x.shape
    o, f2 = weight.shape
    assert f == f2, "weight feature dim must match x"
    assert bias.shape == (o,)

    if tile_n is None:
        tile_n = _choose_tile_n(n)
    n_pad = -(-n // tile_n) * tile_n                 # cdiv * tile_n
    if not (tile_n == n_pad or tile_n % 128 == 0):
        raise ValueError(
            "tile_n must be a multiple of 128 (lane-dense blocks) or cover the "
            f"whole (padded) batch; got tile_n={tile_n}, N={n}")
    if n_pad != n:
        x = jnp.pad(x, ((0, n_pad - n), (0, 0)))     # padded rows are sliced off below

    x_t = x.T                                        # (F, N_pad) feature-major
    w_t = weight.T                                   # (F, O)

    grid = (n_pad // tile_n,)

    y_t = pl.pallas_call(
        _linear_kernel,
        out_shape=jax.ShapeDtypeStruct((o, n_pad), x.dtype),
        grid_spec=pltpu.PrefetchScalarGridSpec(
            num_scalar_prefetch=0,
            grid=grid,
            in_specs=[
                pl.BlockSpec((f, tile_n), lambda i: (0, i)),          # x_t tile
                pl.BlockSpec((f, o), lambda i: (0, 0)),               # weight (resident)
                pl.BlockSpec(memory_space=pltpu.MemorySpace.SMEM),    # bias scalars
            ],
            out_specs=pl.BlockSpec((o, tile_n), lambda i: (0, i)),    # lane-dense output
        ),
        compiler_params=pltpu.CompilerParams(
            dimension_semantics=("parallel",),        # shards batch grid on v7x megacore
        ),
    )(x_t, w_t, bias)

    return y_t.T[:n]                                  # back to (N, O), drop padding


if __name__ == "__main__":
    # Module hyperparameters (defaults of WTPregression)
    n_feature = 10
    n_output = 1

    key = jax.random.PRNGKey(0)
    k_x, k_w, k_b, k_x2 = jax.random.split(key, 4)

    # Deterministic parameter init mimicking nn.Linear's uniform(-1/sqrt(F), 1/sqrt(F))
    bound = 1.0 / jnp.sqrt(jnp.float32(n_feature))
    weight = jax.random.uniform(
        k_w, (n_output, n_feature), jnp.float32, minval=-bound, maxval=bound)
    bias = jax.random.uniform(
        k_b, (n_output,), jnp.float32, minval=-bound, maxval=bound)

    # Case 1: module-default tiny batch (single full-array block).
    x_small = jax.random.normal(k_x, (8, n_feature), jnp.float32)
    y_small = jax.block_until_ready(wtp_regression_forward(x_small, weight, bias))
    ref_small = jnp.einsum("nf,of->no", x_small, weight,
                           precision=jax.lax.Precision.HIGHEST) + bias
    assert y_small.shape == (8, n_output)
    assert jnp.allclose(y_small, ref_small, atol=1e-5, rtol=1e-5)

    # Case 2: larger batch exercising the tiled, pipelined grid (8 steps of 512 rows).
    x_big = jax.random.normal(k_x2, (4096, n_feature), jnp.float32)
    y_big = jax.block_until_ready(
        wtp_regression_forward(x_big, weight, bias, tile_n=512))
    ref_big = jnp.einsum("nf,of->no", x_big, weight,
                         precision=jax.lax.Precision.HIGHEST) + bias
    assert y_big.shape == (4096, n_output)
    assert jnp.allclose(y_big, ref_big, atol=1e-5, rtol=1e-5)

    print("KERNEL_OK")
</pallas_src>

<mosaic_0001>
module attributes {stable_mosaic.version = 11 : i64} {
  func.func @_linear_kernel(%arg0: i32, %arg1: memref<10x8xf32, #tpu.memory_space<vmem>>, %arg2: memref<10x1xf32, #tpu.memory_space<vmem>>, %arg3: memref<1xf32, #tpu.memory_space<smem>>, %arg4: memref<1x8xf32, #tpu.memory_space<vmem>>) attributes {dimension_semantics = [#tpu.dimension_semantics<parallel>], iteration_bounds = array<i64: 1>, scalar_prefetch = 0 : i64, scratch_operands = 0 : i64, tpu.core_type = #tpu.core_type<tc>, window_params = [{transform_indices = @transform_0, window_bounds = array<i64: 10, 8>}, {pipeline_mode = #tpu.pipeline_mode<synchronous>, transform_indices = @transform_1, window_bounds = array<i64: 10, 1>}, {transform_indices = @transform_2, window_bounds = array<i64: 1>}, {transform_indices = @transform_3, window_bounds = array<i64: 1, 8>}]} {
    %c0 = arith.constant 0 : index
    %c0_0 = arith.constant 0 : index
    %0 = vector.load %arg1[%c0, %c0_0] : memref<10x8xf32, #tpu.memory_space<vmem>>, vector<10x8xf32>
    %c0_1 = arith.constant 0 : index
    %c0_2 = arith.constant 0 : index
    %1 = vector.load %arg2[%c0_1, %c0_2] : memref<10x1xf32, #tpu.memory_space<vmem>>, vector<10x1xf32>
    %2 = vector.broadcast %1 : vector<10x1xf32> to vector<10x8xf32>
    %3 = arith.mulf %0, %2 : vector<10x8xf32>
    %cst = arith.constant dense<0.000000e+00> : vector<8xf32>
    %4 = vector.multi_reduction <add>, %3, %cst [0] : vector<10x8xf32> to vector<8xf32>
    %5 = vector.shape_cast %4 : vector<8xf32> to vector<1x8xf32>
    %c0_3 = arith.constant 0 : index
    %6 = memref.load %arg3[%c0_3] : memref<1xf32, #tpu.memory_space<smem>>
    %7 = vector.broadcast %6 : f32 to vector<1x8xf32>
    %8 = arith.addf %5, %7 : vector<1x8xf32>
    %c0_4 = arith.constant 0 : index
    %c0_5 = arith.constant 0 : index
    %9 = vector.load %arg4[%c0_4, %c0_5] : memref<1x8xf32, #tpu.memory_space<vmem>>, vector<1x8xf32>
    tpu.vector_store %arg4[%c0_4, %c0_5], %8 {strides = array<i32>} : memref<1x8xf32, #tpu.memory_space<vmem>>, vector<1x8xf32>,
    return
  }
  func.func @transform_0(%arg0: i32) -> (i32, i32) {
    %c0_i32 = arith.constant 0 : i32
    %c0_i32_0 = arith.constant 0 : i32
    return %c0_i32, %arg0 : i32, i32
  }
  func.func @transform_1(%arg0: i32) -> (i32, i32) {
    %c0_i32 = arith.constant 0 : i32
    %c0_i32_0 = arith.constant 0 : i32
    %c0_i32_1 = arith.constant 0 : i32
    return %c0_i32, %c0_i32_0 : i32, i32
  }
  func.func @transform_2(%arg0: i32) -> i32 {
    %c0_i32 = arith.constant 0 : i32
    %c0_i32_0 = arith.constant 0 : i32
    return %c0_i32 : i32
  }
  func.func @transform_3(%arg0: i32) -> (i32, i32) {
    %c0_i32 = arith.constant 0 : i32
    %c0_i32_0 = arith.constant 0 : i32
    return %c0_i32, %arg0 : i32, i32
  }
}

</mosaic_0001>

<bundles_post_ra>
// kernel: tpu_custom_call.1
= control target key start
LH: loop header
LB: loop body
LE: loop exit
PB: predicated region body
PF: predicated region fallthrough
CT: control target
= control target key end

     0   :  { %v89_v1 = vmov 0   ;;  %s138_s0 = inlined_call_operand.vmem [shape: f32[10,8], index: 0, kind: input, shape index: {}]   ;;  %s139_s1 = inlined_call_operand.vmem [shape: f32[10,1], index: 1, kind: input, shape index: {}]   ;;  %s140_s2 = inlined_call_operand.<no memory space> [shape: f32[1], index: 2, kind: input, shape index: {}]   ;;  %s141_s3 = inlined_call_operand.hbm [shape: f32[1,8], index: 3, kind: output, shape index: {}]  }
   0x1   :  { %v18_v0 = vld [vmem:[%s139_s1] sm:$0xff]  ;;  %64 = vset.pattern.permute.xlu0 %v89_v1 }
   0x2   :  { %9 = vsyncpa [#allocation4], 0  ;;  %22 = vperm.xlu0 %64, %v18_v0   ;;  %v19_v2 = vld [vmem:[%s139_s1 + $0x8] sm:$0x3]  ;;  %v16_v4 = vld [vmem:[%s138_s0] sm:$0xff]  ;;  %vm32_vm0 = vcmask 64512   ;;  %v44_v17 = vstv %s140_s2 }
   0x3   :  { %v17_v5 = vld [vmem:[%s138_s0 + $0x8] sm:$0x3]  ;;  %vm34_vm1 = vcmask 58368   ;;  %s90_s21 = smov [#allocation3]   ;;  %vm46_vm2 = vcmask 57344  }
   0x4   :  { %s54_s22 = sshll.u32 %s90_s21, 4  ;;  %s55_s22 = int_to_ptr.vmem [resolvable:$true] %s54_s22 }
   0x5   :  { %s65_s0 = scalar_lea.vmem %s55_s22, 16  ;;  %s69_s23 = scalar_lea.vmem %s55_s22, 32 }
   0x6   :  { %27 = vperm.xlu0 %64, %v19_v2   ;;  %p66_p0 = scmp.ne.s32.totalorder %s55_s22, %s65_s0  ;;  %p70_p1 = scmp.lt.s32.totalorder %s55_s22, %s55_s22 }
   0x7   :  { %p71_p2 = scmp.lt.s32.totalorder %s69_s23, %s65_s0 }
   0x9   :  { %p72_p3 = por %p71_p2, %p70_p1 }
   0xb   :  { %p73_p4 = pnand %p72_p3, %p66_p0 }
  0x81   :  { %v23_v3 = vpop.permute.xlu0 %22 }
  0x82   :  { %v30_v6 = vmul.f32 %v23_v3, %v16_v4 }
  0x84   :  { %v33_v9 = vsel %vm32_vm0, %v30_v6, 0.0 }
  0x85   :  { %v28_v7 = vpop.permute.xlu0 %27 }
  0x86   :  { %v31_v8 = vmul.f32 %v28_v7, %v17_v5 }
  0x88   :  { %v35_v10 = vsel %vm34_vm1, %v31_v8, 0.0 }
  0x89   :  { %v36_v11 = vadd.f32 %v35_v10, %v33_v9 }
  0x8b   :  { %v37_v12 = vrot.slane %v36_v11, 4 }
  0x8d   :  { %v38_v13 = vadd.f32 %v37_v12, %v36_v11 }
  0x8f   :  { %v39_v14 = vrot.slane %v38_v13, 2 }
  0x91   :  { %v40_v15 = vadd.f32 %v39_v14, %v38_v13 }
  0x93   :  { %v41_v16 = vrot.slane %v40_v15, 1 }
  0x95   :  { %v42_v18 = vadd.f32 %v41_v16, %v40_v15 }
  0x97   :  { %v45_v19 = vadd.f32 %v44_v17, %v42_v18 }
  0x99   :  { %47 = vst.msk [vmem:[#allocation3] sm:$0x1] %vm46_vm2, %v45_v19 }
  0x9a   :  { %76 = shalt.err (!%p73_p4)
}
  0x9b   :  { %s77_s26 = scalar_lea.hbm %s141_s3, 16 }
  0x9c   :  { %p78_p5 = scmp.ne.s32.totalorder %s141_s3, %s77_s26  ;;  %p81_p6 = scmp.lt.u32.totalorder %s77_s26, %s141_s3 }
  0x9e   :  { %p83_p7 = pnand %p81_p6, %p78_p5 }
  0xa0   :  { %86 = shalt.err (!%p83_p7)
}
  0xa1   :  { %57 = dma.vmem_to_hbm [thread:$0]  %s55_s22, 16, %s141_s3, [#allocation4]  }
  0xa2   :  { %87 = dma.done.wait [#allocation4], 16  }
  0xa3   :  { %88 = vsyncadd [#allocation4], 4294967280 }
  0xa4   :  { %61 = vsyncpa [#allocation4], 1 }

</bundles_post_ra>
